<compile_context>
chip_gen: v5e
topology: v5e:2x2
jax: 0.10.0
libtpu: 0.0.40
codegen_flags: <defaults>
</compile_context>

<pallas_src>
import jax
import jax.numpy as jnp
from jax import lax
from jax.experimental import pallas as pl
from jax.experimental.pallas import tpu as pltpu


# ----------------------------------------------------------------------------
# Kernel:
#   qo = q * ct + pairswap(q) * st                    (scale & sign pre-folded)
#   ko = k * (ct*r2) + pairswap(k) * (st*r2)          (r2 = 1/t^2)
# pairswap(x)[2i] = x[2i+1], pairswap(x)[2i+1] = x[2i]
# ----------------------------------------------------------------------------
def _xpos_kernel(q_ref, k_ref, ct_ref, st_ref, r2_ref, qo_ref, ko_ref):
    q = q_ref[...]                    # (TL, HD)
    k = k_ref[...]                    # (TL, HD)
    ct = ct_ref[...]                  # (TL, HD)  c * t   (heads tiled)
    st = st_ref[...]                  # (TL, HD)  sign * s * t
    r2 = r2_ref[...]                  # (TL, HD)  1 / t^2
    hd = q.shape[-1]

    # Lane-parity mask at lane width only (broadcasts over rows).
    parity_even = (lax.broadcasted_iota(jnp.int32, (1, hd), 1) & 1) == 0

    def pairswap(x):
        # nxt[j] = x[(j+1) % hd]  (roll by hd-1 == roll by -1; shift must be >= 0)
        nxt = pltpu.roll(x, shift=hd - 1, axis=1)
        # prv[j] = x[(j-1) % hd]
        prv = pltpu.roll(x, shift=1, axis=1)
        # even lane j -> x[j+1], odd lane j -> x[j-1]; the wraparound lanes
        # (j = hd-1 in nxt, j = 0 in prv) are never selected by the mask.
        return jnp.where(parity_even, nxt, prv)

    cit = ct * r2                     # c / t
    sit = st * r2                     # sign * s / t

    qo_ref[...] = q * ct + pairswap(q) * st
    ko_ref[...] = k * cit + pairswap(k) * sit


# ----------------------------------------------------------------------------
# Buffer construction (mirrors xpos.__init__, deterministic). 2-D (S, D).
# ----------------------------------------------------------------------------
def make_xpos_base(key_head_size: int, max_sequence_length: int = 1024):
    if key_head_size % 2 != 0:
        raise ValueError("key head size must be divisible by 2")
    theta_base = 10000.0
    alpha = 0.4 * key_head_size
    drange = jnp.arange(2, key_head_size + 2, 2, dtype=jnp.float32)          # (D/2,)
    theta = jnp.repeat((1.0 / theta_base) ** (drange / key_head_size), 2)    # (D,)
    zeta = jnp.repeat((drange / (key_head_size / 2) + alpha) / (1 + alpha), 2)

    half = max_sequence_length // 2
    seq = jnp.arange(-half, max_sequence_length - half, dtype=jnp.float32) / 512.0  # (S,)
    ang = seq[:, None] * theta[None, :]                                       # (S, D)
    c = jnp.cos(ang)
    s = jnp.sin(ang)
    t = zeta[None, :] ** seq[:, None]                                          # (S, D)
    invt = 1.0 / t
    return c, s, t, invt


def make_xpos_folded(c, s, t, invt, num_heads: int):
    """Fold scale + even-lane sign into the trig buffers, tile across heads so
    they are element-wise against the (L, H*D) layout, and build r2 = 1/t^2 so
    only three buffer streams need to be read in the kernel."""
    D = c.shape[-1]
    sign = jnp.where(jnp.arange(D) % 2 == 0, -1.0, 1.0).astype(c.dtype)        # (D,)
    ct = jnp.tile(c * t, (1, num_heads))                  # (S, H*D)
    st = jnp.tile((sign * s) * t, (1, num_heads))         # (S, H*D)
    r2 = jnp.tile(invt * invt, (1, num_heads))            # (S, H*D)
    return ct, st, r2


# ----------------------------------------------------------------------------
# Wrapper: flatten heads into lanes, tile over sequence, launch the kernel.
# ----------------------------------------------------------------------------
def xpos_forward(queries, keys, start, end, ct, st, r2, *, seq_tile=512):
    L, H, D = queries.shape
    HD = H * D
    assert seq_tile % 8 == 0

    q2 = queries.reshape(L, HD)
    k2 = keys.reshape(L, HD)

    # jit-friendly (works for traced `start` too).
    ct_sl = lax.dynamic_slice_in_dim(ct, start, L, axis=0)
    st_sl = lax.dynamic_slice_in_dim(st, start, L, axis=0)
    r2_sl = lax.dynamic_slice_in_dim(r2, start, L, axis=0)

    # Tile over the sequence axis (block rows must be a multiple of 8 or == L).
    tl = L if L <= seq_tile else seq_tile
    spec = pl.BlockSpec((tl, HD), lambda i: (i, 0))

    qo, ko = pl.pallas_call(
        _xpos_kernel,
        out_shape=(
            jax.ShapeDtypeStruct((L, HD), queries.dtype),
            jax.ShapeDtypeStruct((L, HD), keys.dtype),
        ),
        grid=(pl.cdiv(L, tl),),
        in_specs=[spec, spec, spec, spec, spec],
        out_specs=(spec, spec),
        compiler_params=pltpu.CompilerParams(
            dimension_semantics=("parallel",),
        ),
    )(q2, k2, ct_sl, st_sl, r2_sl)

    return qo.reshape(L, H, D), ko.reshape(L, H, D)


# ----------------------------------------------------------------------------
# Pure-JAX reference (direct transcription of the PyTorch forward).
# ----------------------------------------------------------------------------
def _rotate_every_two_ref(x):
    out = jnp.stack((-x[..., 1::2], x[..., 0::2]), axis=-1)
    return out.reshape(x.shape)


def xpos_forward_ref(queries, keys, start, end, c, s, t, invt):
    cs = c[start:end][:, None, :]
    ss = s[start:end][:, None, :]
    ts = t[start:end][:, None, :]
    its = invt[start:end][:, None, :]
    q = (queries * cs + _rotate_every_two_ref(queries) * ss) * ts
    k = (keys * cs + _rotate_every_two_ref(keys) * ss) * its
    return q, k


if __name__ == "__main__":
    key_head_size = 32
    max_sequence_length = 128
    L, H, D = 8, 4, key_head_size          # H*D = 128 -> lane-dense output
    start, end = 40, 40 + L

    c, s, t, invt = make_xpos_base(key_head_size, max_sequence_length)
    ct, st, r2 = make_xpos_folded(c, s, t, invt, H)

    k0, k1 = jax.random.split(jax.random.PRNGKey(0))
    queries = jax.random.normal(k0, (L, H, D), dtype=jnp.float32)
    keys = jax.random.normal(k1, (L, H, D), dtype=jnp.float32)

    qo, ko = xpos_forward(queries, keys, start, end, ct, st, r2)
    jax.block_until_ready((qo, ko))

    q_ref, k_ref = xpos_forward_ref(queries, keys, start, end, c, s, t, invt)
    assert jnp.allclose(qo, q_ref, atol=1e-5, rtol=1e-5), float(
        jnp.max(jnp.abs(qo - q_ref))
    )
    assert jnp.allclose(ko, k_ref, atol=1e-5, rtol=1e-5), float(
        jnp.max(jnp.abs(ko - k_ref))
    )

    print("KERNEL_OK")
</pallas_src>

<mosaic_0001>
module attributes {stable_mosaic.version = 11 : i64} {
  func.func @_xpos_kernel(%arg0: i32, %arg1: memref<8x128xf32, #tpu.memory_space<vmem>>, %arg2: memref<8x128xf32, #tpu.memory_space<vmem>>, %arg3: memref<8x128xf32, #tpu.memory_space<vmem>>, %arg4: memref<8x128xf32, #tpu.memory_space<vmem>>, %arg5: memref<8x128xf32, #tpu.memory_space<vmem>>, %arg6: memref<8x128xf32, #tpu.memory_space<vmem>>, %arg7: memref<8x128xf32, #tpu.memory_space<vmem>>) attributes {dimension_semantics = [#tpu.dimension_semantics<parallel>], iteration_bounds = array<i64: 1>, scalar_prefetch = 0 : i64, scratch_operands = 0 : i64, tpu.core_type = #tpu.core_type<tc>, window_params = [{transform_indices = @transform_0, window_bounds = array<i64: 8, 128>}, {transform_indices = @transform_1, window_bounds = array<i64: 8, 128>}, {transform_indices = @transform_2, window_bounds = array<i64: 8, 128>}, {transform_indices = @transform_3, window_bounds = array<i64: 8, 128>}, {transform_indices = @transform_4, window_bounds = array<i64: 8, 128>}, {transform_indices = @transform_5, window_bounds = array<i64: 8, 128>}, {transform_indices = @transform_6, window_bounds = array<i64: 8, 128>}]} {
    %c0 = arith.constant 0 : index
    %c0_0 = arith.constant 0 : index
    %0 = vector.load %arg1[%c0, %c0_0] : memref<8x128xf32, #tpu.memory_space<vmem>>, vector<8x128xf32>
    %c0_1 = arith.constant 0 : index
    %c0_2 = arith.constant 0 : index
    %1 = vector.load %arg2[%c0_1, %c0_2] : memref<8x128xf32, #tpu.memory_space<vmem>>, vector<8x128xf32>
    %c0_3 = arith.constant 0 : index
    %c0_4 = arith.constant 0 : index
    %2 = vector.load %arg3[%c0_3, %c0_4] : memref<8x128xf32, #tpu.memory_space<vmem>>, vector<8x128xf32>
    %c0_5 = arith.constant 0 : index
    %c0_6 = arith.constant 0 : index
    %3 = vector.load %arg4[%c0_5, %c0_6] : memref<8x128xf32, #tpu.memory_space<vmem>>, vector<8x128xf32>
    %c0_7 = arith.constant 0 : index
    %c0_8 = arith.constant 0 : index
    %4 = vector.load %arg5[%c0_7, %c0_8] : memref<8x128xf32, #tpu.memory_space<vmem>>, vector<8x128xf32>
    %5 = tpu.iota {dimensions = array<i32: 1>} : vector<1x128xi32>
    %c1_i32 = arith.constant 1 : i32
    %6 = vector.broadcast %c1_i32 : i32 to vector<1x128xi32>
    %7 = arith.andi %5, %6 : vector<1x128xi32>
    %c0_i32 = arith.constant 0 : i32
    %8 = vector.broadcast %c0_i32 : i32 to vector<1x128xi32>
    %9 = arith.cmpi eq, %7, %8 : vector<1x128xi32>
    %10 = arith.mulf %2, %4 : vector<8x128xf32>
    %11 = arith.mulf %3, %4 : vector<8x128xf32>
    %12 = arith.mulf %0, %2 : vector<8x128xf32>
    %c127_i32 = arith.constant 127 : i32
    %13 = tpu.dynamic_rotate %0 by %c127_i32 dim 1 : vector<8x128xf32>, i32 -> vector<8x128xf32>
    %c1_i32_9 = arith.constant 1 : i32
    %14 = tpu.dynamic_rotate %0 by %c1_i32_9 dim 1 : vector<8x128xf32>, i32 -> vector<8x128xf32>
    %15 = vector.shape_cast %9 : vector<1x128xi1> to vector<1x128xi1>
    %16 = vector.broadcast %15 : vector<1x128xi1> to vector<8x128xi1>
    %17 = arith.select %16, %13, %14 : vector<8x128xi1>, vector<8x128xf32>
    %18 = arith.mulf %17, %3 : vector<8x128xf32>
    %19 = arith.addf %12, %18 : vector<8x128xf32>
    %c0_10 = arith.constant 0 : index
    %c0_11 = arith.constant 0 : index
    %20 = vector.load %arg6[%c0_10, %c0_11] : memref<8x128xf32, #tpu.memory_space<vmem>>, vector<8x128xf32>
    tpu.vector_store %arg6[%c0_10, %c0_11], %19 {strides = array<i32>} : memref<8x128xf32, #tpu.memory_space<vmem>>, vector<8x128xf32>,
    %21 = arith.mulf %1, %10 : vector<8x128xf32>
    %c127_i32_12 = arith.constant 127 : i32
    %22 = tpu.dynamic_rotate %1 by %c127_i32_12 dim 1 : vector<8x128xf32>, i32 -> vector<8x128xf32>
    %c1_i32_13 = arith.constant 1 : i32
    %23 = tpu.dynamic_rotate %1 by %c1_i32_13 dim 1 : vector<8x128xf32>, i32 -> vector<8x128xf32>
    %24 = vector.shape_cast %9 : vector<1x128xi1> to vector<1x128xi1>
    %25 = vector.broadcast %24 : vector<1x128xi1> to vector<8x128xi1>
    %26 = arith.select %25, %22, %23 : vector<8x128xi1>, vector<8x128xf32>
    %27 = arith.mulf %26, %11 : vector<8x128xf32>
    %28 = arith.addf %21, %27 : vector<8x128xf32>
    %c0_14 = arith.constant 0 : index
    %c0_15 = arith.constant 0 : index
    %29 = vector.load %arg7[%c0_14, %c0_15] : memref<8x128xf32, #tpu.memory_space<vmem>>, vector<8x128xf32>
    tpu.vector_store %arg7[%c0_14, %c0_15], %28 {strides = array<i32>} : memref<8x128xf32, #tpu.memory_space<vmem>>, vector<8x128xf32>,
    return
  }
  func.func @transform_0(%arg0: i32) -> (i32, i32) {
    %c0_i32 = arith.constant 0 : i32
    %c0_i32_0 = arith.constant 0 : i32
    return %arg0, %c0_i32 : i32, i32
  }
  func.func @transform_1(%arg0: i32) -> (i32, i32) {
    %c0_i32 = arith.constant 0 : i32
    %c0_i32_0 = arith.constant 0 : i32
    return %arg0, %c0_i32 : i32, i32
  }
  func.func @transform_2(%arg0: i32) -> (i32, i32) {
    %c0_i32 = arith.constant 0 : i32
    %c0_i32_0 = arith.constant 0 : i32
    return %arg0, %c0_i32 : i32, i32
  }
  func.func @transform_3(%arg0: i32) -> (i32, i32) {
    %c0_i32 = arith.constant 0 : i32
    %c0_i32_0 = arith.constant 0 : i32
    return %arg0, %c0_i32 : i32, i32
  }
  func.func @transform_4(%arg0: i32) -> (i32, i32) {
    %c0_i32 = arith.constant 0 : i32
    %c0_i32_0 = arith.constant 0 : i32
    return %arg0, %c0_i32 : i32, i32
  }
  func.func @transform_5(%arg0: i32) -> (i32, i32) {
    %c0_i32 = arith.constant 0 : i32
    %c0_i32_0 = arith.constant 0 : i32
    return %arg0, %c0_i32 : i32, i32
  }
  func.func @transform_6(%arg0: i32) -> (i32, i32) {
    %c0_i32 = arith.constant 0 : i32
    %c0_i32_0 = arith.constant 0 : i32
    return %arg0, %c0_i32 : i32, i32
  }
}

</mosaic_0001>

<bundles_post_ra>
// kernel: tpu_custom_call.1
= control target key start
LH: loop header
LB: loop body
LE: loop exit
PB: predicated region body
PF: predicated region fallthrough
CT: control target
= control target key end

     0   :  { %12 = vsyncpa [#allocation3], 0  ;;  %s410_s0 = inlined_call_operand.hbm [shape: f32[8,128], index: 0, kind: input, shape index: {}]   ;;  %s411_s1 = inlined_call_operand.hbm [shape: f32[8,128], index: 1, kind: input, shape index: {}]   ;;  %s412_s2 = inlined_call_operand.hbm [shape: f32[8,128], index: 2, kind: input, shape index: {}]   ;;  %s413_s3 = inlined_call_operand.hbm [shape: f32[8,128], index: 3, kind: input, shape index: {}]   ;;  %s414_s4 = inlined_call_operand.hbm [shape: f32[8,128], index: 4, kind: input, shape index: {}]   ;;  %s415_s5 = inlined_call_operand.hbm [shape: f32[8,128], index: 5, kind: output, shape index: {0}]   ;;  %s416_s6 = inlined_call_operand.hbm [shape: f32[8,128], index: 6, kind: output, shape index: {1}]  }
   0x1   :  { %13 = vsyncpa [#allocation6], 0 }
   0x2   :  { %14 = vsyncpa [#allocation9], 0 }
   0x3   :  { %15 = vsyncpa [#allocation4], 0  ;;  %s33_s23 = sshll.u32 %s411_s1, 4  ;;  %s34_s23 = int_to_ptr.hbm [resolvable:$true] %s33_s23 }
   0x4   :  { %16 = vsyncpa [#allocation13], 0  ;;  %s345_s24 = smov [#allocation5]   ;;  %s55_s28 = sshll.u32 %s413_s3, 4  ;;  %s56_s28 = int_to_ptr.hbm [resolvable:$true] %s55_s28 }
   0x5   :  { %s35_s25 = sshll.u32 %s345_s24, 4  ;;  %s346_s29 = smov [#allocation8]   ;;  %s36_s25 = int_to_ptr.vmem [resolvable:$true] %s35_s25 }
   0x6   :  { %38 = dma.hbm_to_vmem [thread:$0]  %s34_s23, 128, %s36_s25, [#allocation6]  }
   0x7   :  { %s57_s30 = sshll.u32 %s346_s29, 4  ;;  %s22_s9 = sshll.u32 %s410_s0, 4  ;;  %s58_s30 = int_to_ptr.vmem [resolvable:$true] %s57_s30  ;;  %s23_s9 = int_to_ptr.hbm [resolvable:$true] %s22_s9 }
   0x8   :  { %60 = dma.hbm_to_vmem [thread:$0]  %s56_s28, 128, %s58_s30, [#allocation9]  }
   0x9   :  { %s44_s11 = sshll.u32 %s412_s2, 4  ;;  %s347_s12 = smov [#allocation2]   ;;  %s45_s11 = int_to_ptr.hbm [resolvable:$true] %s44_s11 }
   0xa   :  { %s24_s13 = sshll.u32 %s347_s12, 4  ;;  %s348_s3 = smov [#allocation7]   ;;  %s25_s13 = int_to_ptr.vmem [resolvable:$true] %s24_s13 }
   0xb   :  { %27 = dma.hbm_to_vmem [thread:$0]  %s23_s9, 128, %s25_s13, [#allocation3]  }
   0xc   :  { %s46_s14 = sshll.u32 %s348_s3, 4  ;;  %s66_s17 = sshll.u32 %s414_s4, 4  ;;  %s47_s14 = int_to_ptr.vmem [resolvable:$true] %s46_s14  ;;  %s67_s17 = int_to_ptr.hbm [resolvable:$true] %s66_s17 }
   0xd   :  { %49 = dma.hbm_to_vmem [thread:$0]  %s45_s11, 128, %s47_s14, [#allocation6]  }
   0xe   :  { %s349_s0 = smov [#allocation10]  }
   0xf   :  { %s68_s18 = sshll.u32 %s349_s0, 4  ;;  %s69_s18 = int_to_ptr.vmem [resolvable:$true] %s68_s18 }
  0x10   :  { %71 = dma.hbm_to_vmem [thread:$0]  %s67_s17, 128, %s69_s18, [#allocation9]  }
  0x11   :  { %335 = dma.done.wait [#allocation3], 128  }
  0x12   :  { %336 = vsyncadd [#allocation3], 4294967168 }
  0x13   :  { %337 = dma.done.wait [#allocation6], 256  }
  0x14   :  { %338 = vsyncadd [#allocation6], 4294967040 }
  0x15   :  { %339 = dma.done.wait [#allocation9], 256  }
  0x16   :  { %340 = vsyncadd [#allocation9], 4294967040  ;;  %v93_v0 = vld [vmem:[#allocation5] sm:$0xff]  ;;  %s350_s2 = smov 127   ;;  %v92_v1 = vld [vmem:[#allocation2] sm:$0xff]  ;;  %s351_s19 = smov 1   ;;  %v97_v2 = vlaneseq }
  0x17   :  { %115 = vrot.lane.b32.xlu1 %v93_v0, %s350_s2  ;;  %104 = vrot.lane.b32.xlu0 %v92_v1, %s350_s2  ;;  %v94_v5 = vld [vmem:[#allocation7] sm:$0xff]  ;;  %v96_v6 = vld [vmem:[#allocation10] sm:$0xff]  ;;  %v95_v9 = vld [vmem:[#allocation8] sm:$0xff]  ;;  %s352_s4 = smov [#allocation12]   ;;  %s141_s23 = sshll.u32 %s416_s6, 4  ;;  %s142_s23 = int_to_ptr.hbm [resolvable:$true] %s141_s23 }
  0x18   :  { %v98_v3 = vand.u32 127, %v97_v2  ;;  %v101_v10 = vmul.f32 %v96_v6, %v94_v5  ;;  %v102_v11 = vmul.f32 %v96_v6, %v95_v9  ;;  %v103_v14 = vmul.f32 %v94_v5, %v92_v1  ;;  %s139_s20 = sshll.u32 %s352_s4, 4  ;;  %s353_s24 = smov [#allocation11]   ;;  %s140_s20 = int_to_ptr.vmem [resolvable:$true] %s139_s20 }
  0x19   :  { %s128_s25 = sshll.u32 %s353_s24, 4  ;;  %s130_s28 = sshll.u32 %s415_s5, 4  ;;  %s129_s25 = int_to_ptr.vmem [resolvable:$true] %s128_s25  ;;  %s131_s28 = int_to_ptr.hbm [resolvable:$true] %s130_s28 }
  0x1a   :  { %v99_v8 = vand.u32 1, %v98_v3  ;;  %v114_v12 = vmul.f32 %v101_v10, %v93_v0 }
  0x1c   :  { %vm100_vm0 = vcmp.eq.s32.totalorder %v99_v8, 0 }
  0x1f   :  { %117 = vrot.lane.b32.xlu1 %v93_v0, %s351_s19  ;;  %106 = vrot.lane.b32.xlu0 %v92_v1, %s351_s19 }
  0x89   :  { %v116_v4 = vpop.permute.xlu1 %115  ;;  %v105_v7 = vpop.permute.xlu0 %104 }
  0x91   :  { %v118_v13 = vpop.permute.xlu1 %117  ;;  %v107_v16 = vpop.permute.xlu0 %106 }
  0x92   :  { %v119_v15 = vsel %vm100_vm0, %v116_v4, %v118_v13  ;;  %v110_v18 = vsel %vm100_vm0, %v105_v7, %v107_v16 }
  0x93   :  { %v120_v17 = vmul.f32 %v119_v15, %v102_v11  ;;  %v111_v19 = vmul.f32 %v110_v18, %v95_v9 }
  0x95   :  { %v121_v20 = vadd.f32 %v120_v17, %v114_v12  ;;  %v112_v21 = vadd.f32 %v111_v19, %v103_v14 }
  0x97   :  { %122 = vst [vmem:[#allocation12] sm:$0xff] %v121_v20 }
  0x98   :  { %113 = vst [vmem:[#allocation11] sm:$0xff] %v112_v21  ;;  %144 = dma.vmem_to_hbm [thread:$0]  %s140_s20, 128, %s142_s23, [#allocation13]  }
  0x99   :  { %133 = dma.vmem_to_hbm [thread:$0]  %s129_s25, 128, %s131_s28, [#allocation4]  }
  0x9a   :  { %341 = dma.done.wait [#allocation4], 128  }
  0x9b   :  { %342 = vsyncadd [#allocation4], 4294967168 }
  0x9c   :  { %343 = dma.done.wait [#allocation13], 128  }
  0x9d   :  { %344 = vsyncadd [#allocation13], 4294967168 }
  0x9e   :  { %153 = vsyncpa [#allocation3], 1 }
  0x9f   :  { %154 = vsyncpa [#allocation6], 1 }
  0xa0   :  { %155 = vsyncpa [#allocation9], 1 }
  0xa1   :  { %156 = vsyncpa [#allocation4], 1 }
  0xa2   :  { %157 = vsyncpa [#allocation13], 1 }

</bundles_post_ra>
